<compile_context>
chip_gen: v7x
topology: tpu7x:2x2x1
jax: 0.10.0
libtpu: 0.0.40
codegen_flags: <defaults>
</compile_context>

<pallas_src>
import jax
import jax.numpy as jnp
from jax.experimental import pallas as pl
from jax.experimental.pallas import tpu as pltpu

NEG_SLOPE = 0.01  # torch.nn.functional.leaky_relu default negative_slope


def _epic_kernel(ctx_lin_ref, x_ref, w_main_ref, bl_ref, wgb_ref, bgb_ref,
                 ctx_out_ref, ret_ref):
    ND = ret_ref.shape[-1]          # N * D_out (lane-dense output width)

    # One MXU pass: block-diagonal columns give the lane-dense point-wise
    # linear, the trailing F columns give x_colsum @ wp_pooled (mean + scaled
    # sum branches pre-folded into wp_pooled).
    main = jnp.dot(x_ref[...], w_main_ref[...],
                   preferred_element_type=jnp.float32)     # (TB, ND + F)

    lin = main[:, :ND] + bl_ref[...]                        # (TB, ND)
    h = ctx_lin_ref[...] + main[:, ND:]                     # (TB, F)
    ctx_pool = jnp.where(h >= 0, h, NEG_SLOPE * h)          # leaky_relu

    # Gate/bias weights are pre-tiled N times along the output dim, so this
    # single matmul yields lane-dense, 128-aligned gate/bias halves.
    gb = (jnp.dot(ctx_pool, wgb_ref[...],
                  preferred_element_type=jnp.float32)
          + bgb_ref[...])                                   # (TB, 2*ND)
    gate = jax.nn.sigmoid(gb[:, :ND])                       # (TB, ND)
    bias = gb[:, ND:]                                       # (TB, ND)

    ret_ref[...] = lin * gate + bias
    ctx_out_ref[...] = ctx_pool


def _wn_weight(v, g):
    """Weight-norm effective weight, transposed to (in, out). v: (out, in), g: (out,)."""
    norm = jnp.sqrt(jnp.sum(v * v, axis=1, keepdims=True))
    return (g[:, None] * v / norm).T


def _full_spec(arr):
    nd = arr.ndim
    return pl.BlockSpec(arr.shape, lambda g, _nd=nd: (0,) * _nd)


def _choose_tb(B, target=512):
    """Batch tile: largest divisor of B that (a) is a multiple of 8 so the
    sublane block dim is dense, (b) stays <= target so the double-buffered
    footprint is far under the 32 MiB scoped-VMEM default (v7x has only
    64 MiB physical), and (c) when possible leaves >= 2 grid steps so the
    "parallel" grid axis can shard across both v7x TensorCores.  Small B with
    no multiple-of-8 divisor falls back to tb == B (block dim == array dim,
    always legal, single step)."""
    divs = [t for t in range(1, B + 1) if B % t == 0]
    good = [t for t in divs if t % 8 == 0 and t <= target]
    if not good:
        return B
    multi = [t for t in good if B // t >= 2]
    if multi and max(multi) * 4 >= min(max(good), target):
        return max(multi)
    return max(good)


def concat_squash_epic_wn(ctx, x, params, sum_scale=0.001, tb=None):
    B, _, F = ctx.shape
    _, N, d = x.shape

    # --- weight-norm effective weights, pre-transposed to (in, out) ----------
    wp = _wn_weight(params["pool_v"], params["pool_g"])          # (F + 2d, F)
    wp_ctx = wp[:F]                                              # (F, F)
    wp_pooled = wp[F:F + d] / N + sum_scale * wp[F + d:]         # (d, F)
    bp = params["pool_b"][None, :]                               # (1, F)

    wl = _wn_weight(params["layer_v"], params["layer_g"])        # (d, D_out)
    wg = _wn_weight(params["gate_v"], params["gate_g"])          # (F, D_out)
    wb = _wn_weight(params["bias_v"], params["bias_g"])          # (F, D_out)
    D_out = wl.shape[1]
    ND = N * D_out

    # Fused main weight: block-diagonal wl (lane-dense linear) + wp_pooled
    # stacked N times (pooled projection via the same contraction).
    w_lin = (jnp.eye(N, dtype=wl.dtype)[:, None, :, None]
             * wl[None, :, None, :]).reshape(N * d, ND)          # (N*d, N*D_out)
    w_main = jnp.concatenate([w_lin, jnp.tile(wp_pooled, (N, 1))], axis=1)

    bl_t = jnp.tile(params["layer_b"], N)[None, :]               # (1, ND)

    # Gate/bias weights column-tiled N times → lane-dense gate/bias output.
    wgb = jnp.concatenate([jnp.tile(wg, (1, N)),
                           jnp.tile(wb, (1, N))], axis=1)        # (F, 2*ND)
    bgb = jnp.concatenate([jnp.tile(params["gate_b"], N),
                           jnp.zeros((ND,), jnp.float32)])[None, :]   # (1, 2*ND)

    # Tiny per-batch ctx projection done as a plain XLA matmul, passed in 2-D.
    ctx_lin = ctx.reshape(B, F) @ wp_ctx + bp                    # (B, F)
    x2 = x.reshape(B, N * d)                                     # (B, N*d)

    if tb is None:
        tb = _choose_tb(B)
    assert B % tb == 0, f"tb={tb} must divide B={B}"
    grid = (B // tb,)

    ctx_pool2d, ret2d = pl.pallas_call(
        _epic_kernel,
        out_shape=(jax.ShapeDtypeStruct((B, F), jnp.float32),
                   jax.ShapeDtypeStruct((B, ND), jnp.float32)),
        grid_spec=pltpu.PrefetchScalarGridSpec(
            num_scalar_prefetch=0,
            grid=grid,
            in_specs=[
                pl.BlockSpec((tb, F), lambda g: (g, 0)),         # ctx_lin
                pl.BlockSpec((tb, N * d), lambda g: (g, 0)),     # x (flattened)
                _full_spec(w_main),
                _full_spec(bl_t),
                _full_spec(wgb),
                _full_spec(bgb),
            ],
            out_specs=[
                pl.BlockSpec((tb, F), lambda g: (g, 0)),         # ctx_pool
                pl.BlockSpec((tb, ND), lambda g: (g, 0)),        # ret (lane-dense)
            ],
        ),
        compiler_params=pltpu.CompilerParams(
            dimension_semantics=("parallel",),
            vmem_limit_bytes=32 * 1024 * 1024),
    )(ctx_lin, x2, w_main, bl_t, wgb, bgb)

    return ctx_pool2d.reshape(B, 1, F), ret2d.reshape(B, N, D_out)


def reference(ctx, x, params, sum_scale=0.001):
    """Pure-JAX reference matching the PyTorch forward."""
    def wn(v, g):
        norm = jnp.sqrt(jnp.sum(v * v, axis=1, keepdims=True))
        return g[:, None] * v / norm

    Wp = wn(params["pool_v"], params["pool_g"])
    Wl = wn(params["layer_v"], params["layer_g"])
    Wg = wn(params["gate_v"], params["gate_g"])
    Wb = wn(params["bias_v"], params["bias_g"])

    x_mean = x.mean(1, keepdims=True)
    x_sum = x.sum(1, keepdims=True) * sum_scale
    cp = jnp.concatenate([ctx, x_mean, x_sum], -1)
    cp = cp @ Wp.T + params["pool_b"]
    cp = jnp.where(cp >= 0, cp, NEG_SLOPE * cp)
    gate = jax.nn.sigmoid(cp @ Wg.T + params["gate_b"])
    bias = cp @ Wb.T
    ret = (x @ Wl.T + params["layer_b"]) * gate + bias
    return cp, ret


if __name__ == "__main__":
    # Small shapes consistent with the module: B=2, N=8 points, dim_in=4,
    # dim_ctx=32, dim_out=32.
    B, N, dim_in, dim_ctx, dim_out = 2, 8, 4, 32, 32
    sum_scale = 0.001

    key = jax.random.PRNGKey(0)
    keys = jax.random.split(key, 12)

    params = {
        "pool_v":  0.2 * jax.random.normal(keys[0], (dim_ctx, 2 * dim_in + dim_ctx), jnp.float32),
        "pool_g":  1.0 + 0.1 * jax.random.normal(keys[1], (dim_ctx,), jnp.float32),
        "pool_b":  0.1 * jax.random.normal(keys[2], (dim_ctx,), jnp.float32),
        "layer_v": 0.2 * jax.random.normal(keys[3], (dim_out, dim_in), jnp.float32),
        "layer_g": 1.0 + 0.1 * jax.random.normal(keys[4], (dim_out,), jnp.float32),
        "layer_b": 0.1 * jax.random.normal(keys[5], (dim_out,), jnp.float32),
        "gate_v":  0.2 * jax.random.normal(keys[6], (dim_out, dim_ctx), jnp.float32),
        "gate_g":  1.0 + 0.1 * jax.random.normal(keys[7], (dim_out,), jnp.float32),
        "gate_b":  0.1 * jax.random.normal(keys[8], (dim_out,), jnp.float32),
        "bias_v":  0.2 * jax.random.normal(keys[9], (dim_out, dim_ctx), jnp.float32),
        "bias_g":  1.0 + 0.1 * jax.random.normal(keys[10], (dim_out,), jnp.float32),
    }

    k_ctx, k_x = jax.random.split(keys[11])
    ctx = jax.random.normal(k_ctx, (B, 1, dim_ctx), jnp.float32)
    x = jax.random.normal(k_x, (B, N, dim_in), jnp.float32)

    ctx_pool, ret = concat_squash_epic_wn(ctx, x, params, sum_scale)
    jax.block_until_ready((ctx_pool, ret))

    ctx_pool_ref, ret_ref = reference(ctx, x, params, sum_scale)
    assert ctx_pool.shape == (B, 1, dim_ctx) and ret.shape == (B, N, dim_out)
    assert jnp.allclose(ctx_pool, ctx_pool_ref, atol=1e-5, rtol=1e-5)
    assert jnp.allclose(ret, ret_ref, atol=1e-5, rtol=1e-5)

    print("KERNEL_OK")
</pallas_src>

<mosaic_0001>
module attributes {stable_mosaic.version = 11 : i64} {
  func.func @_epic_kernel(%arg0: i32, %arg1: memref<2x32xf32, #tpu.memory_space<vmem>>, %arg2: memref<2x32xf32, #tpu.memory_space<vmem>>, %arg3: memref<32x288xf32, #tpu.memory_space<vmem>>, %arg4: memref<1x256xf32, #tpu.memory_space<vmem>>, %arg5: memref<32x512xf32, #tpu.memory_space<vmem>>, %arg6: memref<1x512xf32, #tpu.memory_space<vmem>>, %arg7: memref<2x32xf32, #tpu.memory_space<vmem>>, %arg8: memref<2x256xf32, #tpu.memory_space<vmem>>) attributes {dimension_semantics = [#tpu.dimension_semantics<parallel>], iteration_bounds = array<i64: 1>, scalar_prefetch = 0 : i64, scratch_operands = 0 : i64, tpu.core_type = #tpu.core_type<tc>, window_params = [{transform_indices = @transform_0, window_bounds = array<i64: 2, 32>}, {transform_indices = @transform_1, window_bounds = array<i64: 2, 32>}, {pipeline_mode = #tpu.pipeline_mode<synchronous>, transform_indices = @transform_2, window_bounds = array<i64: 32, 288>}, {pipeline_mode = #tpu.pipeline_mode<synchronous>, transform_indices = @transform_3, window_bounds = array<i64: 1, 256>}, {pipeline_mode = #tpu.pipeline_mode<synchronous>, transform_indices = @transform_4, window_bounds = array<i64: 32, 512>}, {pipeline_mode = #tpu.pipeline_mode<synchronous>, transform_indices = @transform_5, window_bounds = array<i64: 1, 512>}, {transform_indices = @transform_6, window_bounds = array<i64: 2, 32>}, {transform_indices = @transform_7, window_bounds = array<i64: 2, 256>}]} {
    %c0 = arith.constant 0 : index
    %c0_0 = arith.constant 0 : index
    %0 = vector.load %arg2[%c0, %c0_0] : memref<2x32xf32, #tpu.memory_space<vmem>>, vector<2x32xf32>
    %c0_1 = arith.constant 0 : index
    %c0_2 = arith.constant 0 : index
    %1 = vector.load %arg3[%c0_1, %c0_2] : memref<32x288xf32, #tpu.memory_space<vmem>>, vector<32x288xf32>
    %cst = arith.constant dense<0.000000e+00> : vector<2x288xf32>
    %2 = tpu.matmul %0, %1, %cst {dimension_numbers = #tpu.dot_dimension_numbers<[1], [0], [0], [1], [0, 0, 1, 1], [], []>} : vector<2x32xf32>, vector<32x288xf32>, vector<2x288xf32> -> vector<2x288xf32>
    %3 = vector.extract_strided_slice %2 {offsets = [0, 0], sizes = [2, 256], strides = [1, 1]} : vector<2x288xf32> to vector<2x256xf32>
    %c0_3 = arith.constant 0 : index
    %c0_4 = arith.constant 0 : index
    %4 = vector.load %arg4[%c0_3, %c0_4] : memref<1x256xf32, #tpu.memory_space<vmem>>, vector<1x256xf32>
    %5 = vector.broadcast %4 : vector<1x256xf32> to vector<2x256xf32>
    %6 = arith.addf %3, %5 : vector<2x256xf32>
    %c0_5 = arith.constant 0 : index
    %c0_6 = arith.constant 0 : index
    %7 = vector.load %arg1[%c0_5, %c0_6] : memref<2x32xf32, #tpu.memory_space<vmem>>, vector<2x32xf32>
    %8 = vector.extract_strided_slice %2 {offsets = [0, 256], sizes = [2, 32], strides = [1, 1]} : vector<2x288xf32> to vector<2x32xf32>
    %9 = arith.addf %7, %8 : vector<2x32xf32>
    %cst_7 = arith.constant 0.000000e+00 : f32
    %10 = vector.broadcast %cst_7 : f32 to vector<2x32xf32>
    %11 = arith.cmpf oge, %9, %10 : vector<2x32xf32>
    %cst_8 = arith.constant 0.00999999977 : f32
    %12 = vector.broadcast %cst_8 : f32 to vector<2x32xf32>
    %13 = arith.mulf %12, %9 : vector<2x32xf32>
    %14 = arith.select %11, %9, %13 : vector<2x32xi1>, vector<2x32xf32>
    %c0_9 = arith.constant 0 : index
    %c0_10 = arith.constant 0 : index
    %15 = vector.load %arg5[%c0_9, %c0_10] : memref<32x512xf32, #tpu.memory_space<vmem>>, vector<32x512xf32>
    %cst_11 = arith.constant dense<0.000000e+00> : vector<2x512xf32>
    %16 = tpu.matmul %14, %15, %cst_11 {dimension_numbers = #tpu.dot_dimension_numbers<[1], [0], [0], [1], [0, 0, 1, 1], [], []>} : vector<2x32xf32>, vector<32x512xf32>, vector<2x512xf32> -> vector<2x512xf32>
    %c0_12 = arith.constant 0 : index
    %c0_13 = arith.constant 0 : index
    %17 = vector.load %arg6[%c0_12, %c0_13] : memref<1x512xf32, #tpu.memory_space<vmem>>, vector<1x512xf32>
    %18 = vector.broadcast %17 : vector<1x512xf32> to vector<2x512xf32>
    %19 = arith.addf %16, %18 : vector<2x512xf32>
    %20 = vector.extract_strided_slice %19 {offsets = [0, 0], sizes = [2, 256], strides = [1, 1]} : vector<2x512xf32> to vector<2x256xf32>
    %21 = arith.negf %20 : vector<2x256xf32>
    %22 = math.exp %21 : vector<2x256xf32>
    %cst_14 = arith.constant 1.000000e+00 : f32
    %23 = vector.broadcast %cst_14 : f32 to vector<2x256xf32>
    %24 = arith.addf %23, %22 : vector<2x256xf32>
    %25 = arith.divf %23, %24 : vector<2x256xf32>
    %26 = vector.extract_strided_slice %19 {offsets = [0, 256], sizes = [2, 256], strides = [1, 1]} : vector<2x512xf32> to vector<2x256xf32>
    %27 = arith.mulf %6, %25 : vector<2x256xf32>
    %28 = arith.addf %27, %26 : vector<2x256xf32>
    %c0_15 = arith.constant 0 : index
    %c0_16 = arith.constant 0 : index
    %29 = vector.load %arg8[%c0_15, %c0_16] : memref<2x256xf32, #tpu.memory_space<vmem>>, vector<2x256xf32>
    tpu.vector_store %arg8[%c0_15, %c0_16], %28 {strides = array<i32>} : memref<2x256xf32, #tpu.memory_space<vmem>>, vector<2x256xf32>,
    %c0_17 = arith.constant 0 : index
    %c0_18 = arith.constant 0 : index
    %30 = vector.load %arg7[%c0_17, %c0_18] : memref<2x32xf32, #tpu.memory_space<vmem>>, vector<2x32xf32>
    tpu.vector_store %arg7[%c0_17, %c0_18], %14 {strides = array<i32>} : memref<2x32xf32, #tpu.memory_space<vmem>>, vector<2x32xf32>,
    return
  }
  func.func @transform_0(%arg0: i32) -> (i32, i32) {
    %c0_i32 = arith.constant 0 : i32
    %c0_i32_0 = arith.constant 0 : i32
    return %arg0, %c0_i32 : i32, i32
  }
  func.func @transform_1(%arg0: i32) -> (i32, i32) {
    %c0_i32 = arith.constant 0 : i32
    %c0_i32_0 = arith.constant 0 : i32
    return %arg0, %c0_i32 : i32, i32
  }
  func.func @transform_2(%arg0: i32) -> (i32, i32) {
    %c0_i32 = arith.constant 0 : i32
    %c0_i32_0 = arith.constant 0 : i32
    %c0_i32_1 = arith.constant 0 : i32
    return %c0_i32, %c0_i32_0 : i32, i32
  }
  func.func @transform_3(%arg0: i32) -> (i32, i32) {
    %c0_i32 = arith.constant 0 : i32
    %c0_i32_0 = arith.constant 0 : i32
    %c0_i32_1 = arith.constant 0 : i32
    return %c0_i32, %c0_i32_0 : i32, i32
  }
  func.func @transform_4(%arg0: i32) -> (i32, i32) {
    %c0_i32 = arith.constant 0 : i32
    %c0_i32_0 = arith.constant 0 : i32
    %c0_i32_1 = arith.constant 0 : i32
    return %c0_i32, %c0_i32_0 : i32, i32
  }
  func.func @transform_5(%arg0: i32) -> (i32, i32) {
    %c0_i32 = arith.constant 0 : i32
    %c0_i32_0 = arith.constant 0 : i32
    %c0_i32_1 = arith.constant 0 : i32
    return %c0_i32, %c0_i32_0 : i32, i32
  }
  func.func @transform_6(%arg0: i32) -> (i32, i32) {
    %c0_i32 = arith.constant 0 : i32
    %c0_i32_0 = arith.constant 0 : i32
    return %arg0, %c0_i32 : i32, i32
  }
  func.func @transform_7(%arg0: i32) -> (i32, i32) {
    %c0_i32 = arith.constant 0 : i32
    %c0_i32_0 = arith.constant 0 : i32
    return %arg0, %c0_i32 : i32, i32
  }
}

</mosaic_0001>

<bundles_post_ra>
// kernel: tpu_custom_call.1
= control target key start
LH: loop header
LB: loop body
LE: loop exit
PB: predicated region body
PF: predicated region fallthrough
CT: control target
= control target key end

     0   :  { %13 = vsyncpa [#allocation3], 0  ;;  %s802_s0 = inlined_call_operand.hbm [shape: f32[2,32], index: 0, kind: input, shape index: {}]   ;;  %s803_s1 = inlined_call_operand.vmem [shape: f32[2,32], index: 1, kind: input, shape index: {}]   ;;  %s804_s2 = inlined_call_operand.hbm [shape: f32[32,288], index: 2, kind: input, shape index: {}]   ;;  %s805_s3 = inlined_call_operand.vmem [shape: f32[1,256], index: 3, kind: input, shape index: {}]   ;;  %s806_s4 = inlined_call_operand.hbm [shape: f32[32,512], index: 4, kind: input, shape index: {}]   ;;  %s807_s5 = inlined_call_operand.vmem [shape: f32[1,512], index: 5, kind: input, shape index: {}]   ;;  %s808_s6 = inlined_call_operand.hbm [shape: f32[2,32], index: 6, kind: output, shape index: {0}]   ;;  %s809_s7 = inlined_call_operand.hbm [shape: f32[2,256], index: 7, kind: output, shape index: {1}]  }
   0x1   :  { %14 = vsyncpa [#allocation6], 0 }
   0x2   :  { %15 = vsyncpa [#allocation4], 0 }
   0x3   :  { %16 = vsyncpa [#allocation10], 0  ;;  %s677_s24 = smov [#allocation5]   ;;  %s559_s28 = scalar_lea.hbm %s804_s2, 1536 }
   0x4   :  { %s34_s25 = sshll.u32 %s677_s24, 4  ;;  %p560_p0 = scmp.ne.s32.totalorder %s804_s2, %s559_s28  ;;  %s35_s25 = int_to_ptr.vmem [resolvable:$true] %s34_s25 }
   0x5   :  { %p563_p1 = scmp.lt.u32.totalorder %s559_s28, %s804_s2 }
   0x7   :  { %p565_p2 = pnand %p563_p1, %p560_p0 }
   0x9   :  { %568 = shalt.err (!%p565_p2)
}
   0xa   :  { %s569_s10 = scalar_lea.vmem %s35_s25, 1536  ;;  %p574_p4 = scmp.lt.s32.totalorder %s35_s25, %s35_s25 }
   0xb   :  { %p570_p3 = scmp.ne.s32.totalorder %s35_s25, %s569_s10  ;;  %p575_p5 = scmp.lt.s32.totalorder %s569_s10, %s569_s10 }
   0xd   :  { %p576_p6 = por %p575_p5, %p574_p4 }
   0xf   :  { %p577_p7 = pnand %p576_p6, %p570_p3 }
  0x11   :  { %580 = shalt.err (!%p577_p7)
}
  0x12   :  { %s678_s11 = smov 384   ;;  %s679_s12 = smov 24  }
  0x13   :  { %40 = dma.hbm_to_vmem [thread:$0]  %s804_s2, 1536, %s35_s25, [#allocation6], %s678_s11, %s678_s11, %s679_s12  }
  0x14   :  { %s680_s15 = smov [#allocation2]   ;;  %s681_s17 = smov [#allocation7]  }
  0x15   :  { %s23_s16 = sshll.u32 %s680_s15, 4  ;;  %s48_s18 = sshll.u32 %s681_s17, 4  ;;  %s24_s16 = int_to_ptr.vmem [resolvable:$true] %s23_s16  ;;  %s49_s18 = int_to_ptr.vmem [resolvable:$true] %s48_s18 }
  0x16   :  { %s581_s21 = scalar_lea.hbm %s802_s0, 32 }
  0x17   :  { %p582_p8 = scmp.ne.s32.totalorder %s802_s0, %s581_s21  ;;  %p585_p9 = scmp.lt.u32.totalorder %s581_s21, %s802_s0 }
  0x19   :  { %p587_p10 = pnand %p585_p9, %p582_p8 }
  0x1b   :  { %590 = shalt.err (!%p587_p10)
}
  0x1c   :  { %s591_s2 = scalar_lea.vmem %s24_s16, 32  ;;  %p596_p12 = scmp.lt.s32.totalorder %s24_s16, %s24_s16 }
  0x1d   :  { %p592_p11 = scmp.ne.s32.totalorder %s24_s16, %s591_s2  ;;  %p597_p13 = scmp.lt.s32.totalorder %s591_s2, %s591_s2 }
  0x1f   :  { %p598_p0 = por %p597_p13, %p596_p12 }
  0x21   :  { %p599_p1 = pnand %p598_p0, %p592_p11 }
  0x23   :  { %602 = shalt.err (!%p599_p1)
}
  0x24   :  { %26 = dma.hbm_to_vmem [thread:$0]  %s802_s0, 32, %s24_s16, [#allocation3]  }
  0x25   :  { %s603_s30 = scalar_lea.hbm %s806_s4, 2048 }
  0x26   :  { %p604_p2 = scmp.ne.s32.totalorder %s806_s4, %s603_s30  ;;  %p607_p3 = scmp.lt.u32.totalorder %s603_s30, %s806_s4 }
  0x28   :  { %p609_p4 = pnand %p607_p3, %p604_p2 }
  0x2a   :  { %612 = shalt.err (!%p609_p4)
}
  0x2b   :  { %s613_s12 = scalar_lea.vmem %s49_s18, 2048  ;;  %p618_p6 = scmp.lt.s32.totalorder %s49_s18, %s49_s18 }
  0x2c   :  { %p614_p5 = scmp.ne.s32.totalorder %s49_s18, %s613_s12  ;;  %p619_p7 = scmp.lt.s32.totalorder %s613_s12, %s613_s12 }
  0x2e   :  { %p620_p8 = por %p619_p7, %p618_p6 }
  0x30   :  { %p621_p9 = pnand %p620_p8, %p614_p5 }
  0x32   :  { %624 = shalt.err (!%p621_p9)
}
  0x33   :  { %s682_s0 = smov 512   ;;  %s683_s13 = smov 32  }
  0x34   :  { %54 = dma.hbm_to_vmem [thread:$0]  %s806_s4, 2048, %s49_s18, [#allocation6], %s682_s0, %s682_s0, %s683_s13  }
  0x35   :  { %669 = dma.done.wait [#allocation3], 32  }
  0x36   :  { %670 = vsyncadd [#allocation3], 4294967264 }
  0x37   :  { %671 = dma.done.wait [#allocation6], 3584  }
  0x38   :  { %672 = vsyncadd [#allocation6], 4294963712  ;;  %v684_v0 = vmov 0.0|0.0   ;;  %vm685_vm0 = vmmov 0   ;;  %v686_v1 = vmov 0.0   ;;  %v69_v2 = vld [vmem:[#allocation5 + $0x10] sm:$0xff] }
  0x39   :  { %517 = vmatprep.subr.bf16.mxu1 %v684_v0  ;;  %506 = vmatprep.mubr.msk.f32.mxu1 %vm685_vm0, %v686_v1  ;;  %v72_v3 = vld [vmem:[#allocation5 + $0x28] sm:$0xff]  ;;  %v75_v4 = vld [vmem:[#allocation5 + $0x40] sm:$0xff]  ;;  %v78_v6 = vld [vmem:[#allocation5 + $0x58] sm:$0xff]  ;;  %vm79_vm1 = vcmask 261120   ;;  %vm454_vm3 = vcmask 254976  }
  0x3a   :  { %147 = vmatprep.mubr.f32.mxu0 %v686_v1  ;;  %v518_v5 = vpack.c.bf16 %v72_v3, %v69_v2  ;;  %v68_v7 = vld [vmem:[#allocation5 + $0x8] sm:$0xff]  ;;  %v71_v8 = vld [vmem:[#allocation5 + $0x20] sm:$0xff]  ;;  %v70_v10 = vld [vmem:[#allocation5 + $0x18] sm:$0xff]  ;;  %v521_v11 = vpack.c.bf16 %v78_v6, %v75_v4 }
  0x3b   :  { %v67_v9 = vld [vmem:[#allocation5] sm:$0xff]  ;;  %v509_v12 = vpack.c.bf16 %v71_v8, %v68_v7  ;;  %v74_v14 = vld [vmem:[#allocation5 + $0x38] sm:$0xff]  ;;  %v77_v15 = vld [vmem:[#allocation5 + $0x50] sm:$0xff] }
  0x3c   :  { %519 = vmatpush3.bf16.msra.mxu1 %v518_v5  ;;  %v511_v13 = vpack.c.bf16 %v70_v10, %v67_v9  ;;  %v73_v16 = vld [vmem:[#allocation5 + $0x30] sm:$0xff]  ;;  %v513_v17 = vpack.c.bf16 %v77_v15, %v74_v14  ;;  %v76_v18 = vld [vmem:[#allocation5 + $0x48] sm:$0xff]  ;;  %v246_v21 = vld [vmem:[#allocation7 + $0x18] sm:$0xff] }
  0x3d   :  { %520 = vmatprep.subr.bf16.mxu1 %v684_v0  ;;  %v244_v19 = vld [vmem:[#allocation7 + $0x8] sm:$0xff]  ;;  %510 = vmatprep.subr.bf16.mxu0 %v509_v12  ;;  %v250_v22 = vld [vmem:[#allocation7 + $0x38] sm:$0xff]  ;;  %v515_v23 = vpack.c.bf16 %v76_v18, %v73_v16  ;;  %v245_v25 = vld [vmem:[#allocation7 + $0x10] sm:$0xff] }
  0x3e   :  { %v248_v20 = vld [vmem:[#allocation7 + $0x28] sm:$0xff]  ;;  %512 = vmatpush1.bf16.msra.mxu0 %v511_v13  ;;  %v531_v24 = vpack.c.bf16 %v250_v22, %v246_v21  ;;  %v249_v26 = vld [vmem:[#allocation7 + $0x30] sm:$0xff]  ;;  %v243_v29 = vld [vmem:[#allocation7] sm:$0xff] }
  0x3f   :  { %v66_v27 = vld [vmem:[%s803_s1] sm:$0x3]  ;;  %514 = vmatprep.subr.bf16.mxu0 %v513_v17  ;;  %v523_v28 = vpack.c.bf16 %v248_v20, %v244_v19  ;;  %v247_v30 = vld [vmem:[#allocation7 + $0x20] sm:$0xff]  ;;  %v533_v31 = vpack.c.bf16 %v249_v26, %v245_v25  ;;  %v252_v33 = vld [vmem:[#allocation7 + $0x48] sm:$0xff]  ;;  %s687_s1 = smov [#allocation8]  }
  0x40   :  { %522 = vmatpush3.bf16.msra.mxu1 %v521_v11  ;;  %v525_v32 = vpack.c.bf16 %v247_v30, %v243_v29  ;;  %v256_v34 = vld [vmem:[#allocation7 + $0x68] sm:$0xff]  ;;  %v254_v35 = vld [vmem:[#allocation7 + $0x58] sm:$0xff]  ;;  %v251_v38 = vld [vmem:[#allocation7 + $0x40] sm:$0xff]  ;;  %s462_s17 = sshll.u32 %s687_s1, 4  ;;  %s463_s17 = int_to_ptr.vmem [resolvable:$true] %s462_s17 }
  0x41   :  { %532 = vmatprep.subr.bf16.mxu1 %v531_v24  ;;  %v527_v36 = vpack.c.bf16 %v256_v34, %v252_v33  ;;  %v258_v37 = vld [vmem:[#allocation7 + $0x78] sm:$0xff]  ;;  %v255_v40 = vld [vmem:[#allocation7 + $0x60] sm:$0xff]  ;;  %v253_v41 = vld [vmem:[#allocation7 + $0x50] sm:$0xff]  ;;  %s625_s18 = scalar_lea.vmem %s463_s17, 32  ;;  %p630_p11 = scmp.lt.s32.totalorder %s463_s17, %s463_s17 }
  0x42   :  { %516 = vmatpush1.bf16.msra.mxu0 %v515_v23  ;;  %v535_v39 = vpack.c.bf16 %v258_v37, %v254_v35  ;;  %v257_v42 = vld [vmem:[#allocation7 + $0x70] sm:$0xff]  ;;  %v529_v43 = vpack.c.bf16 %v255_v40, %v251_v38  ;;  %v238_v45 = vld [vmem:[#allocation2] sm:$0x3]  ;;  %p626_p10 = scmp.ne.s32.totalorder %s463_s17, %s625_s18  ;;  %p631_p12 = scmp.lt.s32.totalorder %s625_s18, %s625_s18 }
  0x43   :  { %507 = vmatmul.mubr.msk.f32.vlgmr.msra.gmra.mrb[0].mxu1 %vm79_vm1, %v66_v27  ;;  %524 = vmatprep.subr.bf16.mxu0 %v523_v28  ;;  %v537_v44 = vpack.c.bf16 %v257_v42, %v253_v41 }
  0x44   :  { %534 = vmatpush1.bf16.msra.mxu1 %v533_v31  ;;  %419 = vmatprep.mubr.f32.mxu1 %v686_v1  ;;  %p632_p13 = por %p631_p12, %p630_p11 }
  0x45   :  { %486 = vmatmul.mubr.msk.f32.vlgmr.msra.gmra.mrb[0].mxu0 %vm79_vm1, %v66_v27  ;;  %536 = vmatprep.subr.bf16.mxu1 %v535_v39 }
  0x46   :  { %526 = vmatpush1.bf16.msra.mxu0 %v525_v32  ;;  %348 = vmatprep.mubr.f32.mxu0 %v686_v1  ;;  %p633_p0 = pnand %p632_p13, %p626_p10 }
  0x47   :  { %528 = vmatprep.subr.bf16.mxu0 %v527_v36 }
  0x48   :  { %538 = vmatpush1.bf16.msra.mxu1 %v537_v44 }
  0x4a   :  { %530 = vmatpush1.bf16.msra.mxu0 %v529_v43 }
 0x116   :  { %v220_v46 = vpop.f32.mrb[0].mxu1 }
 0x117   :  { %v239_v47 = vadd.f32 %v238_v45, %v220_v46  ;;  %v508_v48 = vpop.f32.mrb[1].mxu1 }
 0x118   :  { %v149_v50 = vpop.f32.mrb[0].mxu0 }
 0x119   :  { %vm240_vm2 = vcmp.ge.f32.partialorder %v239_v47, 0.0  ;;  %v241_v49 = vmul.f32 0.01, %v239_v47  ;;  %v151_v51 = vpop.f32.mrb[1].mxu0 }
 0x11b   :  { %v242_v52 = vsel %vm240_vm2, %v239_v47, %v241_v49 }
 0x11c   :  { %488 = vmatmul.mubr.msk.f32.vlgmr.msra.gmra.mrb[2].mxu0 %vm79_vm1, %v242_v52  ;;  %489 = vmatmul.mubr.msk.f32.vlgmr.msra.gmra.mrb[2].mxu1 %vm79_vm1, %v242_v52  ;;  %455 = vst.msk [vmem:[#allocation8] sm:$0x3] %vm454_vm3, %v242_v52 }
 0x11d   :  { %636 = shalt.err (!%p633_p0)
}
 0x11e   :  { %s637_s21 = scalar_lea.hbm %s808_s6, 32 }
 0x11f   :  { %p638_p1 = scmp.ne.s32.totalorder %s808_s6, %s637_s21  ;;  %p641_p2 = scmp.lt.u32.totalorder %s637_s21, %s808_s6 }
 0x121   :  { %p643_p3 = pnand %p641_p2, %p638_p1 }
 0x123   :  { %646 = shalt.err (!%p643_p3)
}
 0x124   :  { %465 = dma.vmem_to_hbm [thread:$0]  %s463_s17, 32, %s808_s6, [#allocation4]   ;;  %v226_v53 = vlaneseq  ;;  %v259_v55 = vld [vmem:[%s807_s5] sm:$0xf] }
 0x125   :  { %v224_v8 = vld [vmem:[%s805_s3] sm:$0x3]  ;;  %s688_s29 = smov [#allocation9]  }
 0x126   :  { %v227_v54 = vshrl.u32 %v226_v53, 7  ;;  %s472_s30 = sshll.u32 %s688_s29, 4  ;;  %s473_s30 = int_to_ptr.vmem [resolvable:$true] %s472_s30 }
 0x127   :  { %s647_s3 = scalar_lea.vmem %s473_s30, 64  ;;  %p652_p5 = scmp.lt.s32.totalorder %s473_s30, %s473_s30 }
 0x128   :  { %v228_v56 = vsub.s32 0, %v227_v54  ;;  %v232_v57 = vsub.s32 1, %v227_v54  ;;  %v271_v9 = vsub.s32 2, %v227_v54  ;;  %v275_v10 = vsub.s32 3, %v227_v54  ;;  %p648_p4 = scmp.ne.s32.totalorder %s473_s30, %s647_s3  ;;  %p653_p6 = scmp.lt.s32.totalorder %s647_s3, %s647_s3 }
 0x12a   :  { %v264_v58 = vrot.slane %v259_v55, %v228_v56  ;;  %v268_v59 = vrot.slane %v259_v55, %v232_v57  ;;  %v229_v11 = vrot.slane %v224_v8, %v228_v56  ;;  %v233_v12 = vrot.slane %v224_v8, %v232_v57  ;;  %p654_p7 = por %p653_p6, %p652_p5 }
 0x12b   :  { %v272_v13 = vrot.slane %v259_v55, %v271_v9  ;;  %v276_v14 = vrot.slane %v259_v55, %v275_v10 }
 0x12c   :  { %v236_v15 = vadd.f32 %v229_v11, %v149_v50  ;;  %v237_v17 = vadd.f32 %v233_v12, %v151_v51  ;;  %p655_p8 = pnand %p654_p7, %p648_p4 }
 0x1ef   :  { %v350_v60 = vpop.f32.mrb[2].mxu0  ;;  %v421_v61 = vpop.f32.mrb[2].mxu1 }
 0x1f0   :  { %v351_v62 = vadd.f32 %v350_v60, %v264_v58  ;;  %v352_v63 = vpop.f32.mrb[3].mxu0  ;;  %v423_v0 = vpop.f32.mrb[3].mxu1  ;;  %v422_v19 = vadd.f32 %v421_v61, %v272_v13 }
 0x1f1   :  { %v353_v1 = vadd.f32 %v352_v63, %v268_v59  ;;  %v424_v21 = vadd.f32 %v423_v0, %v276_v14 }
 0x1f2   :  { %v490_v2 = vmul.f32 -1.442695, %v351_v62 }
 0x1f3   :  { %v491_v3 = vmul.f32 -1.442695, %v353_v1 }
 0x1f4   :  { %551 = vpow2.f32 %v490_v2 }
 0x1f5   :  { %553 = vpow2.f32 %v491_v3 }
 0x1fe   :  { %v552_v4 = vpop.eup %551 }
 0x1ff   :  { %v554_v5 = vpop.eup %553  ;;  %v432_v6 = vadd.f32 1.0, %v552_v4 }
 0x200   :  { %v433_v7 = vadd.f32 1.0, %v554_v5 }
 0x201   :  { %555 = vrcp.f32 %v432_v6 }
 0x202   :  { %557 = vrcp.f32 %v433_v7 }
 0x20b   :  { %v556_v16 = vpop.eup %555 }
 0x20c   :  { %v558_v18 = vpop.eup %557  ;;  %v438_v20 = vmul.f32 %v556_v16, %v236_v15 }
 0x20d   :  { %v439_v22 = vmul.f32 %v558_v18, %v237_v17 }
 0x20e   :  { %v440_v23 = vadd.f32 %v438_v20, %v422_v19 }
 0x20f   :  { %v441_v24 = vadd.f32 %v439_v22, %v424_v21 }
 0x211   :  { %v444_v25 = vcombine.low %v440_v23, %v441_v24 }
 0x213   :  { %492 = vst.sshfl [vmem:[#allocation9] sm:$0x33 pattern:$0x76325410] %v444_v25 }
 0x214   :  { %658 = shalt.err (!%p655_p8)
}
 0x215   :  { %s659_s10 = scalar_lea.hbm %s809_s7, 64 }
 0x216   :  { %p660_p9 = scmp.ne.s32.totalorder %s809_s7, %s659_s10  ;;  %p663_p10 = scmp.lt.u32.totalorder %s659_s10, %s809_s7 }
 0x218   :  { %p665_p11 = pnand %p663_p10, %p660_p9 }
 0x21a   :  { %668 = shalt.err (!%p665_p11)
}
 0x21b   :  { %475 = dma.vmem_to_hbm [thread:$0]  %s473_s30, 64, %s809_s7, [#allocation10]  }
 0x21c   :  { %673 = dma.done.wait [#allocation4], 32  }
 0x21d   :  { %674 = vsyncadd [#allocation4], 4294967264 }
 0x21e   :  { %675 = dma.done.wait [#allocation10], 64  }
 0x21f   :  { %676 = vsyncadd [#allocation10], 4294967232 }
 0x220   :  { %482 = vsyncpa [#allocation3], 1 }
 0x221   :  { %483 = vsyncpa [#allocation6], 1 }
 0x222   :  { %484 = vsyncpa [#allocation4], 1 }
 0x223   :  { %485 = vsyncpa [#allocation10], 1 }

</bundles_post_ra>
